<compile_context>
chip_gen: v6e
topology: v6e:2x2x1
jax: 0.10.0
libtpu: 0.0.40
codegen_flags: <defaults>
</compile_context>

<pallas_src>
import jax
import jax.numpy as jnp
from jax.experimental import pallas as pl
from jax.experimental.pallas import tpu as pltpu


# ---------------------------------------------------------------------------
# Kernels
# ---------------------------------------------------------------------------

def _dqn_fwd_kernel(xT_ref, w1T_ref, w2T_ref, bias_ref, qT_ref, act_ref):
    H = w1T_ref.shape[0]
    A = w2T_ref.shape[0]

    xT = xT_ref[...]                         # (S, TB)  bf16
    b1 = bias_ref[0:H, :]                    # (H, 1)   f32
    b2 = bias_ref[H:H + A, :]                # (A, 1)   f32

    # hidden = relu(W1^T @ x^T + b1), f32 accumulation on the MXU.
    h = jnp.dot(w1T_ref[...], xT, preferred_element_type=jnp.float32)   # (H, TB)
    h = jnp.maximum(h + b1, 0.0)

    # q = W2^T @ hidden + b2
    q = jnp.dot(w2T_ref[...], h.astype(jnp.bfloat16),
                preferred_element_type=jnp.float32) + b2                # (A, TB)

    # Emit q as bf16 (halves the dominant output HBM traffic).
    qb = q.astype(jnp.bfloat16)
    qT_ref[...] = qb

    # Greedy action over the *emitted* (bf16-rounded) q, first index on ties,
    # on the otherwise-idle XLU slot. Stored as int8 (A=8 fits easily).
    qf = qb.astype(jnp.float32)
    q_max = jnp.max(qf, axis=0, keepdims=True)                          # (1, TB)
    idx = jax.lax.broadcasted_iota(jnp.int32, qf.shape, 0)              # (A, TB)
    act = jnp.min(jnp.where(qf == q_max, idx, A), axis=0, keepdims=True)
    act_ref[...] = act.astype(jnp.int8)


def _dqn_act_kernel(xT_ref, w1T_ref, w2T_ref, bias_ref, act_ref):
    # Action-only variant for DQN.act(): identical math, no q output
    # (drops ~75% of the per-element HBM output traffic).
    H = w1T_ref.shape[0]
    A = w2T_ref.shape[0]

    xT = xT_ref[...]
    b1 = bias_ref[0:H, :]
    b2 = bias_ref[H:H + A, :]

    h = jnp.dot(w1T_ref[...], xT, preferred_element_type=jnp.float32)
    h = jnp.maximum(h + b1, 0.0)
    q = jnp.dot(w2T_ref[...], h.astype(jnp.bfloat16),
                preferred_element_type=jnp.float32) + b2

    # Same bf16 rounding as the forward kernel so both paths agree exactly.
    qf = q.astype(jnp.bfloat16).astype(jnp.float32)
    q_max = jnp.max(qf, axis=0, keepdims=True)
    idx = jax.lax.broadcasted_iota(jnp.int32, qf.shape, 0)
    act = jnp.min(jnp.where(qf == q_max, idx, A), axis=0, keepdims=True)
    act_ref[...] = act.astype(jnp.int8)


# ---------------------------------------------------------------------------
# Wrappers
# ---------------------------------------------------------------------------

def _pick_batch_tile(B, requested):
    """Large batch tiles to amortize per-step overhead, but keep >=~8 grid
    steps on big batches (v7x megacore) and don't blow up tiny batches."""
    if requested is not None:
        return int(requested)
    tb = pl.next_power_of_2(max(pl.cdiv(B, 8), 1))
    return int(min(max(tb, 256), 32768))


def _prep_inputs(x, w1, b1, w2, b2, TB):
    B, S = x.shape
    B_pad = pl.cdiv(B, TB) * TB
    # Feature-major (transposed) layout, bf16 streaming; cast fused with the
    # transpose so x is touched exactly once in the wrapper.
    xT = jnp.pad(x.T.astype(jnp.bfloat16), ((0, 0), (0, B_pad - B)))    # (S, B_pad)
    w1T = w1.T.astype(jnp.bfloat16)                                     # (H, S)
    w2T = w2.T.astype(jnp.bfloat16)                                     # (A, H)
    bias = jnp.concatenate([b1, b2]).astype(jnp.float32)[:, None]       # (H+A, 1)
    return xT, w1T, w2T, bias, B_pad


def _common_specs(S, H, A, TB):
    in_specs = [
        # x tiles move with the batch grid axis ...
        pl.BlockSpec((S, TB), lambda i: (0, i)),
        # ... weights/bias use the same block every step => VMEM-resident.
        pl.BlockSpec((H, S), lambda i: (0, 0)),
        pl.BlockSpec((A, H), lambda i: (0, 0)),
        pl.BlockSpec((H + A, 1), lambda i: (0, 0)),
    ]
    compiler_params = pltpu.CompilerParams(
        dimension_semantics=("parallel",),   # batch tiles independent
        vmem_limit_bytes=32 * 1024 * 1024,
    )
    return in_specs, compiler_params


def dqn_forward(x, w1, b1, w2, b2, *, batch_tile=None, q_layout="batch_major"):
    """Fused DQN forward + greedy action.

    x: (B, S) f32, w1: (S, H), b1: (H,), w2: (H, A), b2: (A,)
    Returns (q, action).
      q_layout="batch_major"  -> q is (B, A) f32 (PyTorch-parity layout)
      q_layout="feature_major"-> q is (A, B) bf16 (no extra HBM transpose pass)
    action is (B,) int32.
    """
    B, S = x.shape
    H = w1.shape[1]
    A = w2.shape[1]
    TB = _pick_batch_tile(B, batch_tile)
    xT, w1T, w2T, bias, B_pad = _prep_inputs(x, w1, b1, w2, b2, TB)
    in_specs, compiler_params = _common_specs(S, H, A, TB)

    flops = 2 * (S * H + H * A) * B_pad
    bytes_accessed = (2 * S + 2 * A + 1) * B_pad + 2 * (S * H + H * A) + 4 * (H + A)

    qT, actT = pl.pallas_call(
        _dqn_fwd_kernel,
        out_shape=(
            jax.ShapeDtypeStruct((A, B_pad), jnp.bfloat16),
            jax.ShapeDtypeStruct((1, B_pad), jnp.int8),
        ),
        grid_spec=pltpu.PrefetchScalarGridSpec(
            num_scalar_prefetch=0,
            grid=(B_pad // TB,),
            in_specs=in_specs,
            out_specs=[
                pl.BlockSpec((A, TB), lambda i: (0, i)),
                pl.BlockSpec((1, TB), lambda i: (0, i)),
            ],
        ),
        compiler_params=compiler_params,
        cost_estimate=pl.CostEstimate(
            flops=flops, transcendentals=0, bytes_accessed=bytes_accessed),
    )(xT, w1T, w2T, bias)

    action = actT[0, :B].astype(jnp.int32)
    if q_layout == "feature_major":
        return qT[:, :B], action                       # (A, B) bf16
    q = qT[:, :B].T.astype(jnp.float32)                # (B, A) f32 (compat path)
    return q, action


def dqn_act(x, w1, b1, w2, b2, *, batch_tile=None):
    """DQN.act(): greedy action only (drops the q output entirely)."""
    B, S = x.shape
    H = w1.shape[1]
    A = w2.shape[1]
    TB = _pick_batch_tile(B, batch_tile)
    xT, w1T, w2T, bias, B_pad = _prep_inputs(x, w1, b1, w2, b2, TB)
    in_specs, compiler_params = _common_specs(S, H, A, TB)

    flops = 2 * (S * H + H * A) * B_pad
    bytes_accessed = (2 * S + 1) * B_pad + 2 * (S * H + H * A) + 4 * (H + A)

    actT = pl.pallas_call(
        _dqn_act_kernel,
        out_shape=jax.ShapeDtypeStruct((1, B_pad), jnp.int8),
        grid_spec=pltpu.PrefetchScalarGridSpec(
            num_scalar_prefetch=0,
            grid=(B_pad // TB,),
            in_specs=in_specs,
            out_specs=pl.BlockSpec((1, TB), lambda i: (0, i)),
        ),
        compiler_params=compiler_params,
        cost_estimate=pl.CostEstimate(
            flops=flops, transcendentals=0, bytes_accessed=bytes_accessed),
    )(xT, w1T, w2T, bias)

    return actT[0, :B].astype(jnp.int32)


# ---------------------------------------------------------------------------
# Reference + init (PyTorch-style) and self-check
# ---------------------------------------------------------------------------

def dqn_reference(x, w1, b1, w2, b2):
    """Pure-JAX reference mirroring the kernel numerics (bf16 weights/acts,
    f32 accumulation, bf16-emitted q)."""
    f32 = jnp.float32
    hp = jax.lax.Precision.HIGHEST
    xb = x.astype(jnp.bfloat16).astype(f32)
    w1b = w1.astype(jnp.bfloat16).astype(f32)
    w2b = w2.astype(jnp.bfloat16).astype(f32)
    h = jnp.maximum(jnp.dot(xb, w1b, precision=hp) + b1, 0.0)
    hb = h.astype(jnp.bfloat16).astype(f32)
    q = jnp.dot(hb, w2b, precision=hp) + b2
    return q.astype(jnp.bfloat16).astype(f32)


def init_params(key, state_dim, hidden_size, num_actions):
    """Deterministic PyTorch-style init: U(-1/sqrt(fan_in), 1/sqrt(fan_in))."""
    k1, k2, k3, k4 = jax.random.split(key, 4)
    bound1 = 1.0 / jnp.sqrt(jnp.float32(state_dim))
    bound2 = 1.0 / jnp.sqrt(jnp.float32(hidden_size))
    w1 = jax.random.uniform(k1, (state_dim, hidden_size), jnp.float32, -bound1, bound1)
    b1 = jax.random.uniform(k2, (hidden_size,), jnp.float32, -bound1, bound1)
    w2 = jax.random.uniform(k3, (hidden_size, num_actions), jnp.float32, -bound2, bound2)
    b2 = jax.random.uniform(k4, (num_actions,), jnp.float32, -bound2, bound2)
    return w1, b1, w2, b2


if __name__ == "__main__":
    batch = 2
    state_dim = 4
    hidden_size = 32
    num_actions = 8

    key = jax.random.PRNGKey(0)
    kx, kp = jax.random.split(key)

    x = jax.random.normal(kx, (batch, state_dim), dtype=jnp.float32)
    w1, b1, w2, b2 = init_params(kp, state_dim, hidden_size, num_actions)

    q, action = dqn_forward(x, w1, b1, w2, b2)
    act_only = dqn_act(x, w1, b1, w2, b2)
    q, action, act_only = jax.block_until_ready((q, action, act_only))

    q_ref = dqn_reference(x, w1, b1, w2, b2)
    assert q.shape == (batch, num_actions)
    assert action.shape == (batch,)
    assert jnp.allclose(q, q_ref, atol=1e-2, rtol=1e-2), "Q mismatch vs reference"
    # Fused argmax (DQN.act) must agree with argmax over the emitted Q values.
    assert jnp.array_equal(action, jnp.argmax(q, axis=1)), "action mismatch"
    assert jnp.array_equal(act_only, action), "act-only kernel mismatch"

    print("KERNEL_OK")
</pallas_src>

<mosaic_0001>
module attributes {stable_mosaic.version = 11 : i64} {
  func.func @_dqn_fwd_kernel(%arg0: i32, %arg1: memref<4x256xbf16, #tpu.memory_space<vmem>>, %arg2: memref<32x4xbf16, #tpu.memory_space<vmem>>, %arg3: memref<8x32xbf16, #tpu.memory_space<vmem>>, %arg4: memref<40x1xf32, #tpu.memory_space<vmem>>, %arg5: memref<8x256xbf16, #tpu.memory_space<vmem>>, %arg6: memref<1x256xi8, #tpu.memory_space<vmem>>) attributes {dimension_semantics = [#tpu.dimension_semantics<parallel>], iteration_bounds = array<i64: 1>, scalar_prefetch = 0 : i64, scratch_operands = 0 : i64, tpu.core_type = #tpu.core_type<tc>, window_params = [{transform_indices = @transform_0, window_bounds = array<i64: 4, 256>}, {pipeline_mode = #tpu.pipeline_mode<synchronous>, transform_indices = @transform_1, window_bounds = array<i64: 32, 4>}, {pipeline_mode = #tpu.pipeline_mode<synchronous>, transform_indices = @transform_2, window_bounds = array<i64: 8, 32>}, {pipeline_mode = #tpu.pipeline_mode<synchronous>, transform_indices = @transform_3, window_bounds = array<i64: 40, 1>}, {transform_indices = @transform_4, window_bounds = array<i64: 8, 256>}, {transform_indices = @transform_5, window_bounds = array<i64: 1, 256>}]} {
    %c0 = arith.constant 0 : index
    %c0_0 = arith.constant 0 : index
    %0 = vector.load %arg1[%c0, %c0_0] : memref<4x256xbf16, #tpu.memory_space<vmem>>, vector<4x256xbf16>
    %c0_1 = arith.constant 0 : index
    %c0_2 = arith.constant 0 : index
    %1 = vector.load %arg4[%c0_1, %c0_2] : memref<40x1xf32, #tpu.memory_space<vmem>>, vector<32x1xf32>
    %c32 = arith.constant 32 : index
    %c0_3 = arith.constant 0 : index
    %2 = vector.load %arg4[%c32, %c0_3] : memref<40x1xf32, #tpu.memory_space<vmem>>, vector<8x1xf32>
    %c0_4 = arith.constant 0 : index
    %c0_5 = arith.constant 0 : index
    %3 = vector.load %arg2[%c0_4, %c0_5] : memref<32x4xbf16, #tpu.memory_space<vmem>>, vector<32x4xbf16>
    %cst = arith.constant dense<0.000000e+00> : vector<32x256xf32>
    %4 = tpu.matmul %3, %0, %cst {dimension_numbers = #tpu.dot_dimension_numbers<[1], [0], [0], [1], [0, 0, 1, 1], [], []>} : vector<32x4xbf16>, vector<4x256xbf16>, vector<32x256xf32> -> vector<32x256xf32>
    %5 = vector.broadcast %1 : vector<32x1xf32> to vector<32x256xf32>
    %6 = arith.addf %4, %5 : vector<32x256xf32>
    %cst_6 = arith.constant 0.000000e+00 : f32
    %7 = vector.broadcast %cst_6 : f32 to vector<32x256xf32>
    %8 = arith.maximumf %6, %7 : vector<32x256xf32>
    %c0_7 = arith.constant 0 : index
    %c0_8 = arith.constant 0 : index
    %9 = vector.load %arg3[%c0_7, %c0_8] : memref<8x32xbf16, #tpu.memory_space<vmem>>, vector<8x32xbf16>
    %10 = arith.truncf %8 : vector<32x256xf32> to vector<32x256xbf16>
    %cst_9 = arith.constant dense<0.000000e+00> : vector<8x256xf32>
    %11 = tpu.matmul %9, %10, %cst_9 {dimension_numbers = #tpu.dot_dimension_numbers<[1], [0], [0], [1], [0, 0, 1, 1], [], []>} : vector<8x32xbf16>, vector<32x256xbf16>, vector<8x256xf32> -> vector<8x256xf32>
    %12 = vector.broadcast %2 : vector<8x1xf32> to vector<8x256xf32>
    %13 = arith.addf %11, %12 : vector<8x256xf32>
    %14 = arith.truncf %13 : vector<8x256xf32> to vector<8x256xbf16>
    %c0_10 = arith.constant 0 : index
    %c0_11 = arith.constant 0 : index
    %15 = vector.load %arg5[%c0_10, %c0_11] : memref<8x256xbf16, #tpu.memory_space<vmem>>, vector<8x256xbf16>
    tpu.vector_store %arg5[%c0_10, %c0_11], %14 {strides = array<i32>} : memref<8x256xbf16, #tpu.memory_space<vmem>>, vector<8x256xbf16>,
    %16 = arith.extf %14 : vector<8x256xbf16> to vector<8x256xf32>
    %cst_12 = arith.constant dense<0xFF800000> : vector<256xf32>
    %17 = vector.multi_reduction <maximumf>, %16, %cst_12 [0] : vector<8x256xf32> to vector<256xf32>
    %18 = vector.shape_cast %17 : vector<256xf32> to vector<1x256xf32>
    %19 = tpu.iota {dimensions = array<i32: 0>} : vector<8x256xi32>
    %20 = vector.broadcast %18 : vector<1x256xf32> to vector<8x256xf32>
    %21 = arith.cmpf oeq, %16, %20 : vector<8x256xf32>
    %c8_i32 = arith.constant 8 : i32
    %22 = vector.broadcast %c8_i32 : i32 to vector<8x256xi32>
    %23 = arith.select %21, %19, %22 : vector<8x256xi1>, vector<8x256xi32>
    %cst_13 = arith.constant dense<2147483647> : vector<256xi32>
    %24 = vector.multi_reduction <minsi>, %23, %cst_13 [0] : vector<8x256xi32> to vector<256xi32>
    %25 = vector.shape_cast %24 : vector<256xi32> to vector<1x256xi32>
    %26 = arith.trunci %25 : vector<1x256xi32> to vector<1x256xi8>
    %c0_14 = arith.constant 0 : index
    %c0_15 = arith.constant 0 : index
    %27 = vector.load %arg6[%c0_14, %c0_15] : memref<1x256xi8, #tpu.memory_space<vmem>>, vector<1x256xi8>
    tpu.vector_store %arg6[%c0_14, %c0_15], %26 {strides = array<i32>} : memref<1x256xi8, #tpu.memory_space<vmem>>, vector<1x256xi8>,
    return
  }
  func.func @transform_0(%arg0: i32) -> (i32, i32) {
    %c0_i32 = arith.constant 0 : i32
    %c0_i32_0 = arith.constant 0 : i32
    return %c0_i32, %arg0 : i32, i32
  }
  func.func @transform_1(%arg0: i32) -> (i32, i32) {
    %c0_i32 = arith.constant 0 : i32
    %c0_i32_0 = arith.constant 0 : i32
    %c0_i32_1 = arith.constant 0 : i32
    return %c0_i32, %c0_i32_0 : i32, i32
  }
  func.func @transform_2(%arg0: i32) -> (i32, i32) {
    %c0_i32 = arith.constant 0 : i32
    %c0_i32_0 = arith.constant 0 : i32
    %c0_i32_1 = arith.constant 0 : i32
    return %c0_i32, %c0_i32_0 : i32, i32
  }
  func.func @transform_3(%arg0: i32) -> (i32, i32) {
    %c0_i32 = arith.constant 0 : i32
    %c0_i32_0 = arith.constant 0 : i32
    %c0_i32_1 = arith.constant 0 : i32
    return %c0_i32, %c0_i32_0 : i32, i32
  }
  func.func @transform_4(%arg0: i32) -> (i32, i32) {
    %c0_i32 = arith.constant 0 : i32
    %c0_i32_0 = arith.constant 0 : i32
    return %c0_i32, %arg0 : i32, i32
  }
  func.func @transform_5(%arg0: i32) -> (i32, i32) {
    %c0_i32 = arith.constant 0 : i32
    %c0_i32_0 = arith.constant 0 : i32
    return %c0_i32, %arg0 : i32, i32
  }
}

</mosaic_0001>

<bundles_post_ra>
// kernel: tpu_custom_call.1
= control target key start
LH: loop header
LB: loop body
LE: loop exit
PB: predicated region body
PF: predicated region fallthrough
CT: control target
= control target key end

     0   :  { %11 = vsyncpa [#allocation3], 0  ;;  %vm78_vm0 = vcmask 1041408   ;;  %v367_v3 = vmov 0   ;;  %vm71_vm1 = vcmask 31744   ;;  %s434_s0 = inlined_call_operand.vmem [shape: bf16[4,256], index: 0, kind: input, shape index: {}]   ;;  %s435_s1 = inlined_call_operand.vmem [shape: bf16[32,4], index: 1, kind: input, shape index: {}]   ;;  %s436_s2 = inlined_call_operand.vmem [shape: bf16[8,32], index: 2, kind: input, shape index: {}]   ;;  %s437_s3 = inlined_call_operand.vmem [shape: f32[40,1], index: 3, kind: input, shape index: {}]   ;;  %s438_s4 = inlined_call_operand.hbm [shape: bf16[8,256], index: 4, kind: output, shape index: {0}]   ;;  %s439_s5 = inlined_call_operand.hbm [shape: s8[1,256], index: 5, kind: output, shape index: {1}]  }
   0x1   :  { %v307_v0 = vld.sshfl [vmem:[%s434_s0] sm:$0x33 pattern:$0x76325410]  ;;  %117 = vmatprep.mubr.bf16.mxu0 %v367_v3  ;;  %320 = vset.pattern.permute.xlu1 %v367_v3  ;;  %v25_v6 = vld [vmem:[%s437_s3 + $0x10] sm:$0xff] }
   0x2   :  { %v70_v1 = vcombine.high %v307_v0, %v307_v0  ;;  %v80_v2 = vsel %vm78_vm0, %v307_v0, 0  ;;  %319 = vset.pattern.permute.xlu0 %v367_v3  ;;  %192 = vmatprep.mubr.bf16.mxu1 %v367_v3  ;;  %v321_v4 = vld [vmem:[%s435_s1] sm:$0xff]  }
   0x3   :  { %v23_v5 = vld [vmem:[%s437_s3] sm:$0xff] }
   0x4   :  { %308 = vmatprep.subr.msk.bf16.mxu0 %vm78_vm0, %v70_v1  ;;  %34 = vperm.xlu1 %320, %v23_v5  }
   0x5   :  { %100 = vmatpush1.bf16.msra.mxu0 %v80_v2 }
   0x6   :  { %12 = vsyncpa [#allocation5], 0  ;;  %44 = vperm.xlu0 %319, %v25_v6   ;;  %v24_v7 = vld [vmem:[%s437_s3 + $0x8] sm:$0xff]  ;;  %v26_v8 = vld [vmem:[%s437_s3 + $0x18] sm:$0xff]  ;;  %vm156_vm2 = vcmask 261120   ;;  %s368_s8 = smov [#allocation2]  }
   0x7   :  { %v27_v9 = vld [vmem:[%s437_s3 + $0x20] sm:$0xff]  ;;  %v322_v10 = vld [vmem:[%s435_s1 + $0x8] sm:$0xff]   ;;  %s283_s9 = sshll.u32 %s368_s8, 4  ;;  %s284_s9 = int_to_ptr.vmem [resolvable:$true] %s283_s9 }
   0x8   :  { %309 = vmatmul.mubr.msk.bf16.vlgmr.msra.gmra.mxu0 %vm71_vm1, %v321_v4  ;;  %39 = vperm.xlu1 %320, %v24_v7   ;;  %v146_v43 = vld [vmem:[%s436_s2] sm:$0xf]  ;;  %s323_s2 = scalar_lea.vmem %s284_s9, 128  ;;  %p328_p1 = scmp.lt.s32.totalorder %s284_s9, %s284_s9 }
   0x9   :  { %127 = vmatprep.mubr.bf16.mxu0 %v367_v3  ;;  %p324_p0 = scmp.ne.s32.totalorder %s284_s9, %s323_s2  ;;  %p329_p2 = scmp.lt.s32.totalorder %s323_s2, %s323_s2 }
   0xa   :  { %49 = vperm.xlu0 %319, %v26_v8  }
   0xb   :  { %p330_p3 = por %p329_p2, %p328_p1 }
   0xd   :  { %p331_p4 = pnand %p330_p3, %p324_p0 }
   0xe   :  { %153 = vperm.xlu0 %319, %v27_v9  }
  0x10   :  { %310 = vmatmul.mubr.msk.bf16.gmra.mxu0 %vm71_vm1, %v322_v10 }
  0x7f   :  { %v35_v14 = vpop.permute.xlu1 %34 }
  0x81   :  { %v45_v15 = vpop.permute.xlu0 %44 }
  0x83   :  { %v40_v19 = vpop.permute.xlu1 %39 }
  0x85   :  { %v50_v20 = vpop.permute.xlu0 %49 }
  0x89   :  { %v154_v44 = vpop.permute.xlu0 %153 }
  0xc8   :  { %v119_v11 = vpop.f32.mrf.mxu0 }
  0xc9   :  { %v120_v34 = vadd.f32 %v119_v11, %v35_v14 }
  0xca   :  { %v121_v12 = vpop.f32.mrf.mxu0 }
  0xcb   :  { %v122_v27 = vadd.f32 %v121_v12, %v35_v14  ;;  %v138_v41 = vmax.f32 %v120_v34, 0.0 }
  0xcc   :  { %v123_v13 = vpop.f32.mrf.mxu0 }
  0xcd   :  { %v124_v29 = vadd.f32 %v123_v13, %v40_v19  ;;  %v139_v36 = vmax.f32 %v122_v27, 0.0 }
  0xce   :  { %v125_v16 = vpop.f32.mrf.mxu0 }
  0xcf   :  { %v126_v22 = vadd.f32 %v125_v16, %v40_v19  ;;  %v140_v38 = vmax.f32 %v124_v29, 0.0 }
  0xd0   :  { %v129_v17 = vpop.f32.mrf.mxu0 }
  0xd1   :  { %v130_v25 = vadd.f32 %v129_v17, %v45_v15  ;;  %v141_v31 = vmax.f32 %v126_v22, 0.0  ;;  %v147_v42 = vpack.c.bf16 %v140_v38, %v138_v41 }
  0xd2   :  { %v131_v18 = vpop.f32.mrf.mxu0 }
  0xd3   :  { %v132_v23 = vadd.f32 %v131_v18, %v45_v15  ;;  %v142_v35 = vmax.f32 %v130_v25, 0.0  ;;  %v148_v40 = vpack.c.bf16 %v141_v31, %v139_v36 }
  0xd4   :  { %v133_v21 = vpop.f32.mrf.mxu0 }
  0xd5   :  { %v134_v24 = vadd.f32 %v133_v21, %v50_v20  ;;  %v143_v32 = vmax.f32 %v132_v23, 0.0 }
  0xd6   :  { %v135_v26 = vpop.f32.mrf.mxu0 }
  0xd7   :  { %v136_v28 = vadd.f32 %v135_v26, %v50_v20  ;;  %v144_v30 = vmax.f32 %v134_v24, 0.0 }
  0xd9   :  { %v145_v33 = vmax.f32 %v136_v28, 0.0  ;;  %v149_v39 = vpack.c.bf16 %v144_v30, %v142_v35 }
  0xdb   :  { %v150_v37 = vpack.c.bf16 %v145_v33, %v143_v32 }
  0xdd   :  { %172 = vmatprep.subr.bf16.mxu1 %v150_v37 }
  0xde   :  { %173 = vmatpush1.bf16.msra.mxu1 %v149_v39 }
  0xdf   :  { %174 = vmatprep.subr.bf16.mxu1 %v148_v40 }
  0xe2   :  { %175 = vmatpush1.bf16.msra.mxu1 %v147_v42 }
  0xe5   :  { %311 = vmatmul.mubr.msk.bf16.vlgmr.msra.gmra.mxu1 %vm156_vm2, %v146_v43 }
 0x1a5   :  { %v194_v45 = vpop.f32.mrf.mxu1 }
 0x1a6   :  { %v195_v46 = vadd.f32 %v194_v45, %v154_v44 }
 0x1a7   :  { %v196_v47 = vpop.f32.mrf.mxu1 }
 0x1a8   :  { %v201_v48 = vpack.c.bf16 %v195_v46, %v195_v46  ;;  %v197_v49 = vadd.f32 %v196_v47, %v154_v44 }
 0x1a9   :  { %v198_v50 = vpop.f32.mrf.mxu1 }
 0x1aa   :  { %v210_v51 = vunpack.c.l.bf16 %v201_v48  ;;  %v202_v52 = vpack.c.bf16 %v197_v49, %v197_v49  ;;  %v314_v53 = vpack.c.bf16 %v197_v49, %v195_v46 }
 0x1ab   :  { %v199_v54 = vpop.f32.mrf.mxu1 }
 0x1ac   :  { %v212_v55 = vrot.slane %v210_v51, 4  ;;  %v211_v56 = vunpack.c.l.bf16 %v202_v52  ;;  %209 = vst [vmem:[#allocation2] sm:$0xff] %v314_v53 }
 0x1ad   :  { %334 = shalt.err (!%p331_p4)
}
 0x1ae   :  { %286 = dma.vmem_to_hbm [thread:$0]  %s284_s9, 128, %s438_s4, [#allocation3]   ;;  %v213_v57 = vmax.f32 %v210_v51, %v212_v55  ;;  %v218_v58 = vrot.slane %v211_v56, 4  ;;  %v224_v61 = vlaneseq  ;;  %v369_v14 = vmov 1966171168  }
 0x1af   :  { %v254_v15 = vunpack.c.l.s4 %v369_v14  ;;  %vm267_vm11 = vcmask 1040384   ;;  %vm268_vm12 = vsmask.f32 0  ;;  %vm270_vm13 = vcmask 1041409   ;;  %s370_s4 = smov [#allocation4]  }
 0x1b0   :  { %v214_v59 = vrot.slane %v213_v57, 2  ;;  %v219_v60 = vmax.f32 %v211_v56, %v218_v58  ;;  %v225_v2 = vshrl.u32 %v224_v61, 7  ;;  %vm271_vm14 = vsmask.f32 1024  ;;  %vm269_vm15 = vmand %vm267_vm11, %vm268_vm12  ;;  %s293_s12 = sshll.u32 %s370_s4, 4  ;;  %s294_s12 = int_to_ptr.vmem [resolvable:$true] %s293_s12 }
 0x1b1   :  { %v255_v20 = vunpack.c.0.s8 %v254_v15  ;;  %vm272_vm0 = vmand %vm270_vm13, %vm271_vm14  ;;  %v274_v28 = vld [vmem:[#allocation4] sm:$0x3]  ;;  %s343_s13 = scalar_lea.vmem %s294_s12, 32  ;;  %p348_p6 = scmp.lt.s32.totalorder %s294_s12, %s294_s12 }
 0x1b2   :  { %v215_v62 = vmax.f32 %v213_v57, %v214_v59  ;;  %v220_v63 = vrot.slane %v219_v60, 2  ;;  %vm273_vm1 = vmor %vm272_vm0, %vm269_vm15  ;;  %p344_p5 = scmp.ne.s32.totalorder %s294_s12, %s343_s13  ;;  %p349_p7 = scmp.lt.s32.totalorder %s343_s13, %s343_s13 }
 0x1b3   :  { %v258_v25 = vsub.s32 %v255_v20, %v225_v2 }
 0x1b4   :  { %v216_v0 = vrot.slane %v215_v62, 1  ;;  %v221_v1 = vmax.f32 %v219_v60, %v220_v63  ;;  %p350_p8 = por %p349_p7, %p348_p6 }
 0x1b6   :  { %v217_v3 = vmax.f32 %v215_v62, %v216_v0  ;;  %v222_v4 = vrot.slane %v221_v1, 1  ;;  %p351_p9 = pnand %p350_p8, %p344_p5 }
 0x1b8   :  { %vm226_vm3 = vcmp.eq.f32.partialorder %v210_v51, %v217_v3  ;;  %v223_v5 = vmax.f32 %v221_v1, %v222_v4 }
 0x1b9   :  { %v228_v6 = vsel %vm226_vm3, %v225_v2, 8 }
 0x1ba   :  { %v230_v7 = vrot.slane %v228_v6, 4  ;;  %vm227_vm4 = vcmp.eq.f32.partialorder %v211_v56, %v223_v5 }
 0x1bb   :  { %v229_v8 = vsel %vm227_vm4, %v225_v2, 8 }
 0x1bc   :  { %vm231_vm5 = vcmp.lt.s32.totalorder %v228_v6, %v230_v7  ;;  %v239_v9 = vrot.slane %v229_v8, 4 }
 0x1bd   :  { %v232_v10 = vsel %vm231_vm5, %v228_v6, %v230_v7 }
 0x1be   :  { %v233_v11 = vrot.slane %v232_v10, 2  ;;  %vm240_vm6 = vcmp.lt.s32.totalorder %v229_v8, %v239_v9 }
 0x1bf   :  { %v241_v12 = vsel %vm240_vm6, %v229_v8, %v239_v9 }
 0x1c0   :  { %vm234_vm7 = vcmp.lt.s32.totalorder %v232_v10, %v233_v11  ;;  %v242_v13 = vrot.slane %v241_v12, 2 }
 0x1c1   :  { %v235_v16 = vsel %vm234_vm7, %v232_v10, %v233_v11 }
 0x1c2   :  { %v236_v17 = vrot.slane %v235_v16, 1  ;;  %vm243_vm8 = vcmp.lt.s32.totalorder %v241_v12, %v242_v13 }
 0x1c3   :  { %v244_v18 = vsel %vm243_vm8, %v241_v12, %v242_v13 }
 0x1c4   :  { %vm237_vm9 = vcmp.lt.s32.totalorder %v235_v16, %v236_v17  ;;  %v245_v19 = vrot.slane %v244_v18, 1 }
 0x1c5   :  { %v238_v21 = vsel %vm237_vm9, %v235_v16, %v236_v17 }
 0x1c6   :  { %vm246_vm10 = vcmp.lt.s32.totalorder %v244_v18, %v245_v19  ;;  %v248_v23 = vpack.c.b16 %v238_v21, %v238_v21 }
 0x1c7   :  { %v247_v22 = vsel %vm246_vm10, %v244_v18, %v245_v19 }
 0x1c8   :  { %v250_v24 = vpack.c.b16 %v247_v22, %v247_v22 }
 0x1ca   :  { %v313_v26 = vpack.c.b8 %v250_v24, %v248_v23 }
 0x1cc   :  { %v259_v27 = vrot.slane %v313_v26, %v258_v25 }
 0x1ce   :  { %v266_v29 = vrot.slane %v259_v27, %v258_v25 }
 0x1d0   :  { %v275_v30 = vsel %vm273_vm1, %v266_v29, %v274_v28 }
 0x1d1   :  { %276 = vst [vmem:[#allocation4] sm:$0x3] %v275_v30 }
 0x1d2   :  { %354 = shalt.err (!%p351_p9)
}
 0x1d3   :  { %296 = dma.vmem_to_hbm [thread:$0]  %s294_s12, 32, %s439_s5, [#allocation5]  }
 0x1d4   :  { %363 = dma.done.wait [#allocation3], 128  }
 0x1d5   :  { %364 = vsyncadd [#allocation3], 4294967168 }
 0x1d6   :  { %365 = dma.done.wait [#allocation5], 32  }
 0x1d7   :  { %366 = vsyncadd [#allocation5], 4294967264 }
 0x1d8   :  { %303 = vsyncpa [#allocation3], 1 }
 0x1d9   :  { %304 = vsyncpa [#allocation5], 1 }

</bundles_post_ra>
